<compile_context>
chip_gen: v6e
topology: v6e:2x2x1
jax: 0.10.0
libtpu: 0.0.40
codegen_flags: <defaults>
</compile_context>

<pallas_src>
import functools

import jax
import jax.numpy as jnp
from jax import lax
from jax.experimental import pallas as pl
from jax.experimental.pallas import tpu as pltpu

# Scoped-VMEM budget: <= v7x's 64 MiB physical (review: keep ~48-56 MiB there) while
# still giving v5e/v6e plenty of double-buffering headroom.
VMEM_LIMIT_BYTES = 48 * 1024 * 1024


def _round_up(x, m):
    return ((x + m - 1) // m) * m


# ----------------------------------------------------------------------------
# Linear: y = x @ w + b   (bf16 MXU operands, f32 accumulation, single K block)
# ----------------------------------------------------------------------------
def _linear_kernel(x_ref, w_ref, b_ref, o_ref):
    x = x_ref[...].astype(jnp.bfloat16)
    w = w_ref[...].astype(jnp.bfloat16)
    acc = jnp.dot(x, w, preferred_element_type=jnp.float32)
    o_ref[...] = (acc + b_ref[...].astype(jnp.float32)).astype(o_ref.dtype)


def pallas_linear(x, w, b, *, out_dtype=None, tm_target=256, tn_target=512):
    """x: (M, K), w: (K, N), b: (1, N) -> (M, N).

    K is consumed whole (no accumulator scratch / K grid axis); M and N use
    pl.cdiv grids with partial edge blocks, so no per-call padding is needed.
    """
    M, K = x.shape
    K2, N = w.shape
    assert K == K2 and b.shape == (1, N)
    # TODO(synk): add a K-tiled accumulator path for K > ~2048 (MViT dims <= 768).
    tm = M if M <= tm_target else tm_target
    tn = N if N <= tn_target else tn_target
    grid = (pl.cdiv(M, tm), pl.cdiv(N, tn))
    out_dtype = x.dtype if out_dtype is None else out_dtype
    return pl.pallas_call(
        _linear_kernel,
        out_shape=jax.ShapeDtypeStruct((M, N), out_dtype),
        grid=grid,
        in_specs=[
            pl.BlockSpec((tm, K), lambda i, j: (i, 0)),
            pl.BlockSpec((K, tn), lambda i, j: (0, j)),
            pl.BlockSpec((1, tn), lambda i, j: (0, j)),
        ],
        out_specs=pl.BlockSpec((tm, tn), lambda i, j: (i, j)),
        compiler_params=pltpu.CompilerParams(
            dimension_semantics=("parallel", "parallel"),
            vmem_limit_bytes=VMEM_LIMIT_BYTES,
        ),
        cost_estimate=pl.CostEstimate(
            flops=2 * M * K * N,
            transcendentals=0,
            bytes_accessed=(x.dtype.itemsize * M * K
                            + w.dtype.itemsize * K * N
                            + jnp.dtype(out_dtype).itemsize * M * N
                            + b.dtype.itemsize * N),
        ),
    )(x, w, b)


# ----------------------------------------------------------------------------
# Flash multi-head attention over 128-lane-aligned q/k/v column groups.
#   grid = (B, q_tiles, kv_tiles);   kv axis is the online-softmax reduction.
# ----------------------------------------------------------------------------
def _flash_attn_kernel(q_ref, k_ref, v_ref, o_ref, m_ref, l_ref, acc_ref, *,
                       num_heads, c, n_tokens, tkv):
    ki = pl.program_id(2)
    dh = c // num_heads
    mask_kv = (n_tokens % tkv) != 0  # trace-time constant

    @pl.when(ki == 0)
    def _():
        m_ref[...] = jnp.full_like(m_ref, -jnp.inf)
        l_ref[...] = jnp.zeros_like(l_ref)
        acc_ref[...] = jnp.zeros_like(acc_ref)

    qb = q_ref[...].astype(jnp.bfloat16)   # (tq,  c_pad); softmax scale folded into w_qkv
    kb = k_ref[...].astype(jnp.bfloat16)   # (tkv, c_pad)
    vb = v_ref[...].astype(jnp.bfloat16)   # (tkv, c_pad)

    if mask_kv:
        base = ki * tkv
        col_valid = (base + lax.broadcasted_iota(jnp.int32, (1, tkv), 1)) < n_tokens
        row_valid = (base + lax.broadcasted_iota(jnp.int32, (tkv, 1), 0)) < n_tokens
        # Zero out-of-range value rows so p @ v never multiplies garbage.
        vb = jnp.where(row_valid, vb, jnp.zeros_like(vb))

    # Static head loop: static lane offsets (no dynamic lane slicing); all per-head
    # state lives in scratch so live ranges stay bounded per head iteration.
    for h in range(num_heads):
        sl = slice(h * dh, (h + 1) * dh)
        s = lax.dot_general(qb[:, sl], kb[:, sl], (((1,), (1,)), ((), ())),
                            preferred_element_type=jnp.float32)      # (tq, tkv) f32
        if mask_kv:
            s = jnp.where(col_valid, s, -jnp.inf)
        m_prev = m_ref[h]                                              # (tq, 1)
        m_new = jnp.maximum(m_prev, jnp.max(s, axis=-1, keepdims=True))
        alpha = jnp.exp(m_prev - m_new)
        p = jnp.exp(s - m_new)                                         # f32 (v5e-safe EUP path)
        l_ref[h] = alpha * l_ref[h] + jnp.sum(p, axis=-1, keepdims=True)
        acc_ref[:, sl] = alpha * acc_ref[:, sl] + jnp.dot(
            p.astype(jnp.bfloat16), vb[:, sl], preferred_element_type=jnp.float32)
        m_ref[h] = m_new

    @pl.when(ki == pl.num_programs(2) - 1)
    def _():
        # Denominator applied to the small (tq, Dh) accumulator (exact divide),
        # then one lane-dense full-width store of the whole (tq, c_pad) tile.
        for h in range(num_heads):
            sl = slice(h * dh, (h + 1) * dh)
            acc_ref[:, sl] = acc_ref[:, sl] / l_ref[h]
        o_ref[...] = acc_ref[...].astype(o_ref.dtype)


def pallas_flash_attention(qkv, *, num_heads, c, c_pad, tq_target=256, tkv_target=512):
    """qkv: (B, N, 3*c_pad) with columns [q | k | v] in 128-aligned c_pad groups
    (real channels in the first c columns of each group) -> (B, N, c_pad) bf16."""
    B, N, C3p = qkv.shape
    assert C3p == 3 * c_pad
    tq = N if N <= tq_target else tq_target
    tkv = N if N <= tkv_target else tkv_target
    grid = (B, pl.cdiv(N, tq), pl.cdiv(N, tkv))
    kernel = functools.partial(_flash_attn_kernel, num_heads=num_heads, c=c,
                               n_tokens=N, tkv=tkv)
    return pl.pallas_call(
        kernel,
        out_shape=jax.ShapeDtypeStruct((B, N, c_pad), jnp.bfloat16),
        grid=grid,
        in_specs=[
            pl.BlockSpec((None, tq, c_pad), lambda b, qi, ki: (b, qi, 0)),   # q cols
            pl.BlockSpec((None, tkv, c_pad), lambda b, qi, ki: (b, ki, 1)),  # k cols
            pl.BlockSpec((None, tkv, c_pad), lambda b, qi, ki: (b, ki, 2)),  # v cols
        ],
        out_specs=pl.BlockSpec((None, tq, c_pad), lambda b, qi, ki: (b, qi, 0)),
        scratch_shapes=[
            pltpu.VMEM((num_heads, tq, 1), jnp.float32),   # running max  m
            pltpu.VMEM((num_heads, tq, 1), jnp.float32),   # running sum  l
            pltpu.VMEM((tq, c_pad), jnp.float32),          # output accumulator
        ],
        compiler_params=pltpu.CompilerParams(
            dimension_semantics=("parallel", "parallel", "arbitrary"),
            vmem_limit_bytes=VMEM_LIMIT_BYTES,
        ),
        cost_estimate=pl.CostEstimate(
            flops=4 * B * N * N * c,
            transcendentals=B * num_heads * N * N,
            bytes_accessed=(qkv.dtype.itemsize * B * N * 3 * c_pad
                            + 2 * B * N * c_pad),
        ),
    )(qkv, qkv, qkv)


# ----------------------------------------------------------------------------
# Module (default config: pools are None -> attention_pool is identity)
# ----------------------------------------------------------------------------
class MultiScaleAttentionPallas:
    def __init__(self, dim, num_heads=8, qkv_bias=False, has_cls_embed=True,
                 key=jax.random.PRNGKey(0)):
        assert dim % num_heads == 0
        self.dim = dim
        self.num_heads = num_heads
        self.has_cls_embed = has_cls_embed
        head_dim = dim // num_heads
        self.scale = head_dim ** (-0.5)
        self.c_pad = _round_up(dim, 128)

        k1, k2, k3, k4 = jax.random.split(key, 4)
        # Raw parameters (nn.Linear semantics, stored (in, out)) — used by the reference.
        self.w_qkv = jax.random.normal(k1, (dim, 3 * dim), jnp.float32) * 0.02
        self.b_qkv = (jax.random.normal(k4, (3 * dim,), jnp.float32) * 0.02
                      if qkv_bias else jnp.zeros((3 * dim,), jnp.float32))
        self.w_proj = jax.random.normal(k2, (dim, dim), jnp.float32) * 0.02
        self.b_proj = jax.random.normal(k3, (dim,), jnp.float32) * 0.02

        # One-time kernel packing (no per-call padding):
        #  * fold the softmax scale into the q columns (weight + bias),
        #  * pad each q/k/v column group to a 128-aligned c_pad slot,
        #  * zero-pad w_proj's input rows to c_pad so it consumes the lane-dense
        #    attention output directly.
        cp = self.c_pad
        w_qkv_p = jnp.zeros((dim, 3 * cp), jnp.float32)
        b_qkv_p = jnp.zeros((1, 3 * cp), jnp.float32)
        group_scale = (self.scale, 1.0, 1.0)
        for g in range(3):
            w_qkv_p = w_qkv_p.at[:, g * cp:g * cp + dim].set(
                self.w_qkv[:, g * dim:(g + 1) * dim] * group_scale[g])
            b_qkv_p = b_qkv_p.at[0, g * cp:g * cp + dim].set(
                self.b_qkv[g * dim:(g + 1) * dim] * group_scale[g])
        self.w_qkv_p = w_qkv_p
        self.b_qkv_p = b_qkv_p
        self.w_proj_p = jnp.zeros((cp, dim), jnp.float32).at[:dim, :].set(self.w_proj)
        self.b_proj_p = self.b_proj.reshape(1, dim)

    def __call__(self, x, thw_shape):
        B, N, C = x.shape
        assert C == self.dim

        # qkv projection (bf16 MXU matmul). Columns are [q | k | v] in 128-aligned
        # groups; per-head columns contiguous inside each group (matches torch's
        # reshape(B, N, 3, H, Dh)).  Output kept in bf16 to halve HBM traffic.
        qkv = pallas_linear(x.reshape(B * N, C), self.w_qkv_p, self.b_qkv_p,
                            out_dtype=jnp.bfloat16)
        qkv = qkv.reshape(B, N, 3 * self.c_pad)   # free leading-dim reshape

        # attention_pool with pool=None is the identity; thw_shape unchanged.
        # TODO(synk): conv/avg/max pooling branch (non-unit kernel/stride) unimplemented.
        out_shape = list(thw_shape)

        # Flash (query/KV-tiled, online-softmax) multi-head attention -> (B, N, c_pad) bf16.
        o = pallas_flash_attention(qkv, num_heads=self.num_heads, c=C, c_pad=self.c_pad)

        # Output projection back to (B, N, C) in the input dtype.
        y = pallas_linear(o.reshape(B * N, self.c_pad), self.w_proj_p, self.b_proj_p,
                          out_dtype=x.dtype)
        return y.reshape(B, N, C), out_shape


# ----------------------------------------------------------------------------
# Pure-JAX f32 reference (correctness check, literal PyTorch math)
# ----------------------------------------------------------------------------
def reference_forward(mod, x, thw_shape):
    B, N, C = x.shape
    H = mod.num_heads
    Dh = C // H
    qkv = x.reshape(B * N, C) @ mod.w_qkv + mod.b_qkv
    qkv = qkv.reshape(B, N, 3, H, Dh).transpose(2, 0, 3, 1, 4)
    q, k, v = qkv[0], qkv[1], qkv[2]
    attn = jnp.einsum("bhnd,bhmd->bhnm", q, k) * mod.scale
    attn = jax.nn.softmax(attn, axis=-1)
    o = jnp.einsum("bhnm,bhmd->bhnd", attn, v)
    o = o.transpose(0, 2, 1, 3).reshape(B * N, C)
    o = o @ mod.w_proj + mod.b_proj
    return o.reshape(B, N, C), list(thw_shape)


if __name__ == "__main__":
    key = jax.random.PRNGKey(0)
    k_param, k_x = jax.random.split(key)

    B, dim, num_heads = 2, 32, 4
    thw_shape = [2, 4, 4]                               # T*H*W = 32 tokens
    N = 1 + thw_shape[0] * thw_shape[1] * thw_shape[2]  # +1 cls token -> 33

    mod = MultiScaleAttentionPallas(dim=dim, num_heads=num_heads, qkv_bias=False,
                                    has_cls_embed=True, key=k_param)
    x = jax.random.normal(k_x, (B, N, dim), jnp.float32)

    out, out_shape = mod(x, thw_shape)
    out = jax.block_until_ready(out)

    ref, ref_shape = reference_forward(mod, x, thw_shape)
    assert out.shape == (B, N, dim)
    assert out_shape == ref_shape == thw_shape
    # bf16 MXU operands / bf16 intermediates => small absolute deviation from the
    # f32 reference; tolerance sized for that.
    max_err = float(jnp.max(jnp.abs(out - ref)))
    assert max_err < 2e-2, f"max abs err = {max_err}"

    print("KERNEL_OK")
</pallas_src>

<mosaic_0001>
module attributes {stable_mosaic.version = 11 : i64} {
  func.func @_linear_kernel(%arg0: i32, %arg1: i32, %arg2: memref<66x32xf32, #tpu.memory_space<vmem>>, %arg3: memref<32x384xf32, #tpu.memory_space<vmem>>, %arg4: memref<1x384xf32, #tpu.memory_space<vmem>>, %arg5: memref<66x384xbf16, #tpu.memory_space<vmem>>) attributes {dimension_semantics = [#tpu.dimension_semantics<parallel>, #tpu.dimension_semantics<parallel>], iteration_bounds = array<i64: 1, 1>, scalar_prefetch = 0 : i64, scratch_operands = 0 : i64, tpu.core_type = #tpu.core_type<tc>, window_params = [{transform_indices = @transform_0, window_bounds = array<i64: 66, 32>}, {transform_indices = @transform_1, window_bounds = array<i64: 32, 384>}, {transform_indices = @transform_2, window_bounds = array<i64: 1, 384>}, {transform_indices = @transform_3, window_bounds = array<i64: 66, 384>}]} {
    %c0 = arith.constant 0 : index
    %c0_0 = arith.constant 0 : index
    %0 = vector.load %arg2[%c0, %c0_0] : memref<66x32xf32, #tpu.memory_space<vmem>>, vector<66x32xf32>
    %1 = arith.truncf %0 : vector<66x32xf32> to vector<66x32xbf16>
    %c0_1 = arith.constant 0 : index
    %c0_2 = arith.constant 0 : index
    %2 = vector.load %arg3[%c0_1, %c0_2] : memref<32x384xf32, #tpu.memory_space<vmem>>, vector<32x384xf32>
    %3 = arith.truncf %2 : vector<32x384xf32> to vector<32x384xbf16>
    %cst = arith.constant dense<0.000000e+00> : vector<66x384xf32>
    %4 = tpu.matmul %1, %3, %cst {dimension_numbers = #tpu.dot_dimension_numbers<[1], [0], [0], [1], [0, 0, 1, 1], [], []>} : vector<66x32xbf16>, vector<32x384xbf16>, vector<66x384xf32> -> vector<66x384xf32>
    %c0_3 = arith.constant 0 : index
    %c0_4 = arith.constant 0 : index
    %5 = vector.load %arg4[%c0_3, %c0_4] : memref<1x384xf32, #tpu.memory_space<vmem>>, vector<1x384xf32>
    %6 = vector.broadcast %5 : vector<1x384xf32> to vector<66x384xf32>
    %7 = arith.addf %4, %6 : vector<66x384xf32>
    %8 = arith.truncf %7 : vector<66x384xf32> to vector<66x384xbf16>
    %c0_5 = arith.constant 0 : index
    %c0_6 = arith.constant 0 : index
    %9 = vector.load %arg5[%c0_5, %c0_6] : memref<66x384xbf16, #tpu.memory_space<vmem>>, vector<66x384xbf16>
    tpu.vector_store %arg5[%c0_5, %c0_6], %8 {strides = array<i32>} : memref<66x384xbf16, #tpu.memory_space<vmem>>, vector<66x384xbf16>,
    return
  }
  func.func @transform_0(%arg0: i32, %arg1: i32) -> (i32, i32) {
    %c0_i32 = arith.constant 0 : i32
    %c0_i32_0 = arith.constant 0 : i32
    return %arg0, %c0_i32 : i32, i32
  }
  func.func @transform_1(%arg0: i32, %arg1: i32) -> (i32, i32) {
    %c0_i32 = arith.constant 0 : i32
    %c0_i32_0 = arith.constant 0 : i32
    return %c0_i32, %arg1 : i32, i32
  }
  func.func @transform_2(%arg0: i32, %arg1: i32) -> (i32, i32) {
    %c0_i32 = arith.constant 0 : i32
    %c0_i32_0 = arith.constant 0 : i32
    return %c0_i32, %arg1 : i32, i32
  }
  func.func @transform_3(%arg0: i32, %arg1: i32) -> (i32, i32) {
    %c0_i32 = arith.constant 0 : i32
    return %arg0, %arg1 : i32, i32
  }
}

</mosaic_0001>

<bundles_post_ra>
// kernel: tpu_custom_call.1
= control target key start
LH: loop header
LB: loop body
LE: loop exit
PB: predicated region body
PF: predicated region fallthrough
CT: control target
= control target key end

     0   :  { %v466_v3 = vmov 0.0   ;;  %vm467_vm0 = vmmov 0   ;;  %v468_v13 = vmov 0   ;;  %s609_s0 = inlined_call_operand.vmem [shape: f32[66,32], index: 0, kind: input, shape index: {}]   ;;  %s610_s1 = inlined_call_operand.vmem [shape: f32[32,384], index: 1, kind: input, shape index: {}]   ;;  %s611_s2 = inlined_call_operand.vmem [shape: f32[1,384], index: 2, kind: input, shape index: {}]   ;;  %s612_s3 = inlined_call_operand.hbm [shape: bf16[66,384], index: 3, kind: output, shape index: {}]  }
   0x1   :  { %v37_v0 = vld [vmem:[%s610_s1 + $0x38] sm:$0xff]  ;;  %v40_v1 = vld [vmem:[%s610_s1 + $0x50] sm:$0xff]  ;;  %v38_v2 = vld [vmem:[%s610_s1 + $0x40] sm:$0xff]  ;;  %414 = vmatprep.subr.bf16.mxu1 %v466_v3  ;;  %418 = vmatprep.mubr.msk.bf16.mxu1 %vm467_vm0, %v466_v3 }
   0x2   :  { %v46_v4 = vpack.c.bf16 %v40_v1, %v37_v0  ;;  %v41_v5 = vld [vmem:[%s610_s1 + $0x58] sm:$0xff]  ;;  %v36_v6 = vld [vmem:[%s610_s1 + $0x30] sm:$0xff]  ;;  %v39_v7 = vld [vmem:[%s610_s1 + $0x48] sm:$0xff]  ;;  %113 = vmatprep.mubr.bf16.mxu0 %v468_v13 }
   0x3   :  { %v47_v8 = vpack.c.bf16 %v41_v5, %v38_v2  ;;  %v45_v9 = vpack.c.bf16 %v39_v7, %v36_v6  ;;  %v31_v10 = vld [vmem:[%s610_s1 + $0x8] sm:$0xff]  ;;  %v34_v11 = vld [vmem:[%s610_s1 + $0x20] sm:$0xff]  ;;  %v32_v12 = vld [vmem:[%s610_s1 + $0x10] sm:$0xff] }
   0x4   :  { %93 = vmatprep.subr.bf16.mxu0 %v46_v4  ;;  %v43_v14 = vpack.c.bf16 %v34_v11, %v31_v10  ;;  %v35_v15 = vld [vmem:[%s610_s1 + $0x28] sm:$0xff]  ;;  %v30_v16 = vld [vmem:[%s610_s1] sm:$0xff]  ;;  %v33_v17 = vld [vmem:[%s610_s1 + $0x18] sm:$0xff] }
   0x5   :  { %415 = vmatpush3.bf16.msra.mxu1 %v47_v8  ;;  %94 = vmatpush1.bf16.msra.mxu0 %v45_v9  ;;  %v44_v18 = vpack.c.bf16 %v35_v15, %v32_v12  ;;  %v42_v19 = vpack.c.bf16 %v33_v17, %v30_v16  ;;  %v16_v20 = vld [vmem:[%s609_s0] sm:$0xff]  ;;  %v17_v21 = vld [vmem:[%s609_s0 + $0x8] sm:$0xff] }
   0x6   :  { %416 = vmatprep.subr.bf16.mxu1 %v466_v3  ;;  %95 = vmatprep.subr.bf16.mxu0 %v43_v14  ;;  %v25_v22 = vpack.c.bf16 %v17_v21, %v16_v20 }
   0x7   :  { %8 = vsyncpa [#allocation3], 0  ;;  %vm65_vm1 = vcmask 261120   ;;  %v18_v23 = vld [vmem:[%s609_s0 + $0x10] sm:$0xff]  ;;  %v19_v24 = vld [vmem:[%s609_s0 + $0x18] sm:$0xff]  ;;  %v50_v34 = vlaneseq }
   0x8   :  { %v26_v25 = vpack.c.bf16 %v19_v24, %v18_v23  ;;  %v20_v26 = vld [vmem:[%s609_s0 + $0x20] sm:$0xff]  ;;  %v21_v27 = vld [vmem:[%s609_s0 + $0x28] sm:$0xff]  ;;  %v22_v29 = vld [vmem:[%s609_s0 + $0x30] sm:$0xff] }
   0x9   :  { %417 = vmatpush3.bf16.msra.mxu1 %v44_v18  ;;  %96 = vmatpush1.bf16.msra.mxu0 %v42_v19  ;;  %v27_v28 = vpack.c.bf16 %v21_v27, %v20_v26  ;;  %v23_v30 = vld [vmem:[%s609_s0 + $0x38] sm:$0xff]  ;;  %v24_v32 = vld [vmem:[%s609_s0 + $0x40] sm:$0x3]  ;;  %v51_v35 = vshrl.u32 %v50_v34, 7  ;;  %s469_s0 = smov [#allocation2]  }
   0xa   :  { %v28_v31 = vpack.c.bf16 %v23_v30, %v22_v29  ;;  %v29_v33 = vpack.c.bf16 %v24_v32, %v24_v32  ;;  %v48_v39 = vld [vmem:[%s611_s2] sm:$0x7]  ;;  %s350_s2 = sshll.u32 %s469_s0, 4  ;;  %s351_s2 = int_to_ptr.vmem [resolvable:$true] %s350_s2 }
   0xb   :  { %v60_v36 = vsub.s32 2, %v51_v35  ;;  %v52_v37 = vsub.s32 0, %v51_v35  ;;  %v56_v38 = vsub.s32 1, %v51_v35  ;;  %s444_s28 = scalar_lea.vmem %s351_s2, 1728  ;;  %p449_p1 = scmp.lt.s32.totalorder %s351_s2, %s351_s2 }
   0xc   :  { %419 = vmatmul.mubr.msk.bf16.vlgmr.msra.gmra.mxu1 %vm65_vm1, %v25_v22  ;;  %361 = vmatmul.mubr.msk.bf16.vlgmr.msra.gmra.mxu0 %vm65_vm1, %v25_v22  ;;  %p445_p0 = scmp.ne.s32.totalorder %s351_s2, %s444_s28  ;;  %p450_p2 = scmp.lt.s32.totalorder %s444_s28, %s444_s28 }
   0xd   :  { %422 = vmatprep.mubr.msk.bf16.mxu1 %vm467_vm0, %v466_v3  ;;  %123 = vmatprep.mubr.bf16.mxu0 %v468_v13  ;;  %v573_v40 = vrot.slane %v48_v39, %v60_v36  ;;  %v575_v41 = vrot.slane %v48_v39, %v52_v37  ;;  %v577_v42 = vrot.slane %v48_v39, %v56_v38 }
   0xe   :  { %p451_p3 = por %p450_p2, %p449_p1 }
  0x10   :  { %p452_p4 = pnand %p451_p3, %p445_p0 }
  0x14   :  { %423 = vmatmul.mubr.msk.bf16.gmra.mxu1 %vm65_vm1, %v26_v25  ;;  %362 = vmatmul.mubr.msk.bf16.gmra.mxu0 %vm65_vm1, %v26_v25 }
  0x15   :  { %426 = vmatprep.mubr.msk.bf16.mxu1 %vm467_vm0, %v466_v3  ;;  %133 = vmatprep.mubr.bf16.mxu0 %v468_v13 }
  0x1c   :  { %427 = vmatmul.mubr.msk.bf16.gmra.mxu1 %vm65_vm1, %v27_v28  ;;  %363 = vmatmul.mubr.msk.bf16.gmra.mxu0 %vm65_vm1, %v27_v28 }
  0x1d   :  { %430 = vmatprep.mubr.msk.bf16.mxu1 %vm467_vm0, %v466_v3  ;;  %143 = vmatprep.mubr.bf16.mxu0 %v468_v13 }
  0x24   :  { %431 = vmatmul.mubr.msk.bf16.gmra.mxu1 %vm65_vm1, %v28_v31  ;;  %364 = vmatmul.mubr.msk.bf16.gmra.mxu0 %vm65_vm1, %v28_v31 }
  0x25   :  { %434 = vmatprep.mubr.msk.bf16.mxu1 %vm467_vm0, %v466_v3  ;;  %153 = vmatprep.mubr.bf16.mxu0 %v468_v13 }
  0x2c   :  { %435 = vmatmul.mubr.msk.bf16.gmra.mxu1 %vm65_vm1, %v29_v33  ;;  %365 = vmatmul.mubr.msk.bf16.gmra.mxu0 %vm65_vm1, %v29_v33 }
  0xcc   :  { %v196_v43 = vpop.f32.mrf.mxu1  ;;  %v115_v44 = vpop.f32.mrf.mxu0 }
  0xcd   :  { %v197_v45 = vadd.f32 %v196_v43, %v573_v40  ;;  %v116_v49 = vadd.f32 %v115_v44, %v575_v41 }
  0xce   :  { %v420_v46 = vpop.f32.mrf.mxu1  ;;  %v117_v47 = vpop.f32.mrf.mxu0 }
  0xcf   :  { %v390_v48 = vpack.c.bf16 %v197_v45, %v197_v45  ;;  %v118_v50 = vadd.f32 %v117_v47, %v577_v42 }
  0xd0   :  { %v199_v51 = vpop.f32.mrf.mxu1  ;;  %v119_v52 = vpop.f32.mrf.mxu0 }
  0xd1   :  { %328 = vst [vmem:[#allocation2 + $0x8] sm:$0xf] %v390_v48  ;;  %v389_v53 = vpack.c.bf16 %v118_v50, %v116_v49  ;;  %v200_v54 = vadd.f32 %v199_v51, %v573_v40  ;;  %v120_v58 = vadd.f32 %v119_v52, %v575_v41 }
  0xd2   :  { %v421_v55 = vpop.f32.mrf.mxu1  ;;  %v121_v56 = vpop.f32.mrf.mxu0 }
  0xd3   :  { %327 = vst [vmem:[#allocation2] sm:$0xff] %v389_v53  ;;  %v392_v57 = vpack.c.bf16 %v200_v54, %v200_v54  ;;  %v122_v59 = vadd.f32 %v121_v56, %v577_v42 }
  0xd4   :  { %v204_v60 = vpop.f32.mrf.mxu1  ;;  %v125_v61 = vpop.f32.mrf.mxu0 }
  0xd5   :  { %330 = vst [vmem:[#allocation2 + $0x14] sm:$0xf] %v392_v57  ;;  %v391_v62 = vpack.c.bf16 %v122_v59, %v120_v58  ;;  %v205_v63 = vadd.f32 %v204_v60, %v573_v40  ;;  %v126_v3 = vadd.f32 %v125_v61, %v575_v41 }
  0xd6   :  { %v424_v0 = vpop.f32.mrf.mxu1  ;;  %v127_v1 = vpop.f32.mrf.mxu0 }
  0xd7   :  { %329 = vst [vmem:[#allocation2 + $0xc] sm:$0xff] %v391_v62  ;;  %v394_v2 = vpack.c.bf16 %v205_v63, %v205_v63  ;;  %v128_v4 = vadd.f32 %v127_v1, %v577_v42 }
  0xd8   :  { %v207_v5 = vpop.f32.mrf.mxu1  ;;  %v129_v6 = vpop.f32.mrf.mxu0 }
  0xd9   :  { %332 = vst [vmem:[#allocation2 + $0x20] sm:$0xf] %v394_v2  ;;  %v393_v7 = vpack.c.bf16 %v128_v4, %v126_v3  ;;  %v208_v8 = vadd.f32 %v207_v5, %v573_v40  ;;  %v130_v12 = vadd.f32 %v129_v6, %v575_v41 }
  0xda   :  { %v425_v9 = vpop.f32.mrf.mxu1  ;;  %v131_v10 = vpop.f32.mrf.mxu0 }
  0xdb   :  { %331 = vst [vmem:[#allocation2 + $0x18] sm:$0xff] %v393_v7  ;;  %v396_v11 = vpack.c.bf16 %v208_v8, %v208_v8  ;;  %v132_v13 = vadd.f32 %v131_v10, %v577_v42 }
  0xdc   :  { %v212_v14 = vpop.f32.mrf.mxu1  ;;  %v135_v15 = vpop.f32.mrf.mxu0 }
  0xdd   :  { %334 = vst [vmem:[#allocation2 + $0x2c] sm:$0xf] %v396_v11  ;;  %v395_v16 = vpack.c.bf16 %v132_v13, %v130_v12  ;;  %v213_v17 = vadd.f32 %v212_v14, %v573_v40  ;;  %v136_v21 = vadd.f32 %v135_v15, %v575_v41 }
  0xde   :  { %v428_v18 = vpop.f32.mrf.mxu1  ;;  %v137_v19 = vpop.f32.mrf.mxu0 }
  0xdf   :  { %333 = vst [vmem:[#allocation2 + $0x24] sm:$0xff] %v395_v16  ;;  %v398_v20 = vpack.c.bf16 %v213_v17, %v213_v17  ;;  %v138_v22 = vadd.f32 %v137_v19, %v577_v42 }
  0xe0   :  { %v215_v23 = vpop.f32.mrf.mxu1  ;;  %v139_v24 = vpop.f32.mrf.mxu0 }
  0xe1   :  { %336 = vst [vmem:[#allocation2 + $0x38] sm:$0xf] %v398_v20  ;;  %v397_v25 = vpack.c.bf16 %v138_v22, %v136_v21  ;;  %v216_v26 = vadd.f32 %v215_v23, %v573_v40  ;;  %v140_v30 = vadd.f32 %v139_v24, %v575_v41 }
  0xe2   :  { %v429_v27 = vpop.f32.mrf.mxu1  ;;  %v141_v28 = vpop.f32.mrf.mxu0 }
  0xe3   :  { %335 = vst [vmem:[#allocation2 + $0x30] sm:$0xff] %v397_v25  ;;  %v400_v29 = vpack.c.bf16 %v216_v26, %v216_v26  ;;  %v142_v31 = vadd.f32 %v141_v28, %v577_v42 }
  0xe4   :  { %v220_v32 = vpop.f32.mrf.mxu1  ;;  %v145_v33 = vpop.f32.mrf.mxu0 }
  0xe5   :  { %338 = vst [vmem:[#allocation2 + $0x44] sm:$0xf] %v400_v29  ;;  %v399_v34 = vpack.c.bf16 %v142_v31, %v140_v30  ;;  %v221_v35 = vadd.f32 %v220_v32, %v573_v40  ;;  %v146_v39 = vadd.f32 %v145_v33, %v575_v41 }
  0xe6   :  { %v432_v36 = vpop.f32.mrf.mxu1  ;;  %v147_v37 = vpop.f32.mrf.mxu0 }
  0xe7   :  { %337 = vst [vmem:[#allocation2 + $0x3c] sm:$0xff] %v399_v34  ;;  %v402_v38 = vpack.c.bf16 %v221_v35, %v221_v35  ;;  %v148_v43 = vadd.f32 %v147_v37, %v577_v42 }
  0xe8   :  { %v223_v44 = vpop.f32.mrf.mxu1  ;;  %v149_v45 = vpop.f32.mrf.mxu0 }
  0xe9   :  { %340 = vst [vmem:[#allocation2 + $0x50] sm:$0xf] %v402_v38  ;;  %v401_v46 = vpack.c.bf16 %v148_v43, %v146_v39  ;;  %v224_v47 = vadd.f32 %v223_v44, %v573_v40  ;;  %v150_v51 = vadd.f32 %v149_v45, %v575_v41 }
  0xea   :  { %v433_v48 = vpop.f32.mrf.mxu1  ;;  %v151_v49 = vpop.f32.mrf.mxu0 }
  0xeb   :  { %339 = vst [vmem:[#allocation2 + $0x48] sm:$0xff] %v401_v46  ;;  %v404_v50 = vpack.c.bf16 %v224_v47, %v224_v47  ;;  %v152_v52 = vadd.f32 %v151_v49, %v577_v42 }
  0xec   :  { %v228_v53 = vpop.f32.mrf.mxu1  ;;  %v155_v54 = vpop.f32.mrf.mxu0 }
  0xed   :  { %342 = vst [vmem:[#allocation2 + $0x5c] sm:$0xf] %v404_v50  ;;  %v403_v55 = vpack.c.bf16 %v152_v52, %v150_v51  ;;  %v229_v56 = vadd.f32 %v228_v53, %v573_v40  ;;  %v156_v60 = vadd.f32 %v155_v54, %v575_v41 }
  0xee   :  { %v436_v57 = vpop.f32.mrf.mxu1  ;;  %v157_v58 = vpop.f32.mrf.mxu0 }
  0xef   :  { %341 = vst [vmem:[#allocation2 + $0x54] sm:$0xff] %v403_v55  ;;  %v406_v59 = vpack.c.bf16 %v229_v56, %v229_v56  ;;  %v158_v61 = vadd.f32 %v157_v58, %v577_v42 }
  0xf0   :  { %v231_v62 = vpop.f32.mrf.mxu1  ;;  %v159_v63 = vpop.f32.mrf.mxu0 }
  0xf1   :  { %344 = vst [vmem:[#allocation2 + $0x68] sm:$0x1] %v406_v59  ;;  %v405_v0 = vpack.c.bf16 %v158_v61, %v156_v60 }
  0xf2   :  { %v437_v1 = vpop.f32.mrf.mxu1  ;;  %v160_v2 = vpop.f32.mrf.mxu0 }
  0xf3   :  { %343 = vst [vmem:[#allocation2 + $0x60] sm:$0x11] %v405_v0 }
  0xf4   :  { %455 = shalt.err (!%p452_p4)
}
  0xf5   :  { %s470_s29 = smov 192   ;;  %s471_s30 = smov 12  }
  0xf6   :  { %356 = dma.vmem_to_hbm [thread:$0]  %s351_s2, 1728, %s612_s3, [#allocation3], %s470_s29, %s470_s29, %s471_s30  }
  0xf7   :  { %464 = dma.done.wait [#allocation3], 1728  }
  0xf8   :  { %465 = vsyncadd [#allocation3], 4294965568 }
  0xf9   :  { %360 = vsyncpa [#allocation3], 1 }

</bundles_post_ra>
